<compile_context>
chip_gen: v7x
topology: tpu7x:2x2x1
jax: 0.10.0
libtpu: 0.0.40
codegen_flags: <defaults>
</compile_context>

<pallas_src>
import math

import jax
import jax.numpy as jnp
from jax.experimental import pallas as pl
from jax.experimental.pallas import tpu as pltpu


def fused_mlp_kernel(x_ref, w_ref, b_ref, o_ref):
    # Single MXU matmul (bf16 in, f32 accumulate) + f32 bias add.
    y = jnp.dot(x_ref[...], w_ref[...], preferred_element_type=jnp.float32)
    o_ref[...] = (y + b_ref[...]).astype(o_ref.dtype)


def _round_up(x: int, m: int) -> int:
    return (x + m - 1) // m * m


def fashion_mnist_model_v0(x_nchw, w1, b1, w2, b2, *, tm_max: int = 1024):
    """Forward pass of FashionMNISTModelV0: Flatten -> Linear -> Linear.

    x_nchw: (B, C, H, W) float32
    w1: (D, hidden)   b1: (1, hidden)     (weights stored as (in, out))
    w2: (hidden, out) b2: (1, out)
    Returns (B, out) float32 logits.
    """
    B = x_nchw.shape[0]
    D = w1.shape[0]
    out_dim = w2.shape[1]

    # --- Exact algebraic fusion of the two Linear layers (no activation between).
    w1f = w1.astype(jnp.float32)
    w2f = w2.astype(jnp.float32)
    W = w1f @ w2f                                     # (D, out)
    b = b1.astype(jnp.float32) @ w2f + b2.astype(jnp.float32)  # (1, out)

    # --- Pad to MXU/vreg-friendly shapes.
    Dp = _round_up(D, 128)                 # 784 -> 896
    Op = _round_up(max(out_dim, 128), 128)  # 10  -> 128 (lane-dense stores)
    TM = min(tm_max, _round_up(B, 8))      # batch tile, multiple of 8
    Bp = _round_up(B, TM)

    x2d = x_nchw.reshape(B, D)             # nn.Flatten on NCHW (row-major)
    x_p = jnp.pad(x2d, ((0, Bp - B), (0, Dp - D))).astype(jnp.bfloat16)
    W_p = jnp.pad(W, ((0, Dp - D), (0, Op - out_dim))).astype(jnp.bfloat16)
    b_p = jnp.pad(b, ((0, 0), (0, Op - out_dim)))      # stays f32

    grid = (Bp // TM,)

    cost = pl.CostEstimate(
        flops=2 * Bp * Dp * Op,
        transcendentals=0,
        bytes_accessed=(x_p.size * 2 + W_p.size * 2 + b_p.size * 4
                        + Bp * Op * 4),
    )

    out_padded = pl.pallas_call(
        fused_mlp_kernel,
        out_shape=jax.ShapeDtypeStruct((Bp, Op), jnp.float32),
        grid=grid,
        in_specs=[
            pl.BlockSpec((TM, Dp), lambda i: (i, 0)),   # x tile, pipelined
            pl.BlockSpec((Dp, Op), lambda i: (0, 0)),   # fused W, VMEM-resident
            pl.BlockSpec((1, Op), lambda i: (0, 0)),    # fused bias, resident
        ],
        out_specs=pl.BlockSpec((TM, Op), lambda i: (i, 0)),
        compiler_params=pltpu.CompilerParams(
            dimension_semantics=("parallel",)),
        cost_estimate=cost,
    )(x_p, W_p, b_p)

    return out_padded[:B, :out_dim]


def init_params(key, input_shape, hidden_units, output_shape):
    """Deterministic init mirroring torch.nn.Linear default (U(-1/sqrt(fan_in), +))."""
    k1, k2, k3, k4 = jax.random.split(key, 4)
    bound1 = 1.0 / math.sqrt(input_shape)
    bound2 = 1.0 / math.sqrt(hidden_units)
    # stored as (in, out) = transpose of torch's (out, in) weight
    w1 = jax.random.uniform(k1, (input_shape, hidden_units),
                            minval=-bound1, maxval=bound1, dtype=jnp.float32)
    b1 = jax.random.uniform(k2, (1, hidden_units),
                            minval=-bound1, maxval=bound1, dtype=jnp.float32)
    w2 = jax.random.uniform(k3, (hidden_units, output_shape),
                            minval=-bound2, maxval=bound2, dtype=jnp.float32)
    b2 = jax.random.uniform(k4, (1, output_shape),
                            minval=-bound2, maxval=bound2, dtype=jnp.float32)
    return w1, b1, w2, b2


if __name__ == "__main__":
    # FashionMNIST-like small test: input 28*28=784, hidden=32, output=10
    B, C, H, W = 8, 1, 28, 28
    input_shape = C * H * W
    hidden_units = 32
    output_shape = 10

    key = jax.random.PRNGKey(0)
    kx, kp = jax.random.split(key)
    x = jax.random.normal(kx, (B, C, H, W), dtype=jnp.float32)
    w1, b1, w2, b2 = init_params(kp, input_shape, hidden_units, output_shape)

    out = fashion_mnist_model_v0(x, w1, b1, w2, b2)
    out = jax.block_until_ready(out)

    # Sanity check against the exact (unfused, f32) pure-JAX reference.
    # Tolerance accounts for the bf16 cast of x / fused W inside the kernel.
    ref = (x.reshape(B, -1) @ w1 + b1) @ w2 + b2
    assert out.shape == (B, output_shape)
    assert jnp.allclose(out, ref, atol=5e-2, rtol=5e-2), (
        float(jnp.max(jnp.abs(out - ref))))

    print("KERNEL_OK")
</pallas_src>

<mosaic_0001>
module attributes {stable_mosaic.version = 11 : i64} {
  func.func @fused_mlp_kernel(%arg0: i32, %arg1: memref<8x896xbf16, #tpu.memory_space<vmem>>, %arg2: memref<896x128xbf16, #tpu.memory_space<vmem>>, %arg3: memref<1x128xf32, #tpu.memory_space<vmem>>, %arg4: memref<8x128xf32, #tpu.memory_space<vmem>>) attributes {dimension_semantics = [#tpu.dimension_semantics<parallel>], iteration_bounds = array<i64: 1>, scalar_prefetch = 0 : i64, scratch_operands = 0 : i64, tpu.core_type = #tpu.core_type<tc>, window_params = [{transform_indices = @transform_0, window_bounds = array<i64: 8, 896>}, {pipeline_mode = #tpu.pipeline_mode<synchronous>, transform_indices = @transform_1, window_bounds = array<i64: 896, 128>}, {pipeline_mode = #tpu.pipeline_mode<synchronous>, transform_indices = @transform_2, window_bounds = array<i64: 1, 128>}, {transform_indices = @transform_3, window_bounds = array<i64: 8, 128>}]} {
    %c0 = arith.constant 0 : index
    %c0_0 = arith.constant 0 : index
    %0 = vector.load %arg1[%c0, %c0_0] : memref<8x896xbf16, #tpu.memory_space<vmem>>, vector<8x896xbf16>
    %c0_1 = arith.constant 0 : index
    %c0_2 = arith.constant 0 : index
    %1 = vector.load %arg2[%c0_1, %c0_2] : memref<896x128xbf16, #tpu.memory_space<vmem>>, vector<896x128xbf16>
    %cst = arith.constant dense<0.000000e+00> : vector<8x128xf32>
    %2 = tpu.matmul %0, %1, %cst {dimension_numbers = #tpu.dot_dimension_numbers<[1], [0], [0], [1], [0, 0, 1, 1], [], []>} : vector<8x896xbf16>, vector<896x128xbf16>, vector<8x128xf32> -> vector<8x128xf32>
    %c0_3 = arith.constant 0 : index
    %c0_4 = arith.constant 0 : index
    %3 = vector.load %arg3[%c0_3, %c0_4] : memref<1x128xf32, #tpu.memory_space<vmem>>, vector<1x128xf32>
    %4 = vector.broadcast %3 : vector<1x128xf32> to vector<8x128xf32>
    %5 = arith.addf %2, %4 : vector<8x128xf32>
    %c0_5 = arith.constant 0 : index
    %c0_6 = arith.constant 0 : index
    %6 = vector.load %arg4[%c0_5, %c0_6] : memref<8x128xf32, #tpu.memory_space<vmem>>, vector<8x128xf32>
    tpu.vector_store %arg4[%c0_5, %c0_6], %5 {strides = array<i32>} : memref<8x128xf32, #tpu.memory_space<vmem>>, vector<8x128xf32>,
    return
  }
  func.func @transform_0(%arg0: i32) -> (i32, i32) {
    %c0_i32 = arith.constant 0 : i32
    %c0_i32_0 = arith.constant 0 : i32
    return %arg0, %c0_i32 : i32, i32
  }
  func.func @transform_1(%arg0: i32) -> (i32, i32) {
    %c0_i32 = arith.constant 0 : i32
    %c0_i32_0 = arith.constant 0 : i32
    %c0_i32_1 = arith.constant 0 : i32
    return %c0_i32, %c0_i32_0 : i32, i32
  }
  func.func @transform_2(%arg0: i32) -> (i32, i32) {
    %c0_i32 = arith.constant 0 : i32
    %c0_i32_0 = arith.constant 0 : i32
    %c0_i32_1 = arith.constant 0 : i32
    return %c0_i32, %c0_i32_0 : i32, i32
  }
  func.func @transform_3(%arg0: i32) -> (i32, i32) {
    %c0_i32 = arith.constant 0 : i32
    %c0_i32_0 = arith.constant 0 : i32
    return %arg0, %c0_i32 : i32, i32
  }
}

</mosaic_0001>

<bundles_post_ra>
// kernel: tpu_custom_call.1
= control target key start
LH: loop header
LB: loop body
LE: loop exit
PB: predicated region body
PF: predicated region fallthrough
CT: control target
= control target key end

     0   :  { %8 = vsyncpa [#allocation3], 0  ;;  %s1077_s0 = inlined_call_operand.hbm [shape: bf16[8,896], index: 0, kind: input, shape index: {}]   ;;  %s1078_s1 = inlined_call_operand.hbm [shape: bf16[896,128], index: 1, kind: input, shape index: {}]   ;;  %s1079_s2 = inlined_call_operand.vmem [shape: f32[1,128], index: 2, kind: input, shape index: {}]   ;;  %s1080_s3 = inlined_call_operand.hbm [shape: f32[8,128], index: 3, kind: output, shape index: {}]  }
   0x1   :  { %9 = vsyncpa [#allocation6], 0 }
   0x2   :  { %10 = vsyncpa [#allocation4], 0  ;;  %s1004_s12 = smov [#allocation2]   ;;  %s1005_s14 = smov [#allocation5]  }
   0x3   :  { %s17_s13 = sshll.u32 %s1004_s12, 4  ;;  %s26_s15 = sshll.u32 %s1005_s14, 4  ;;  %s18_s13 = int_to_ptr.vmem [resolvable:$true] %s17_s13  ;;  %s1031_s15 = int_to_ptr.vmem [resolvable:$true] %s26_s15 }
   0x4   :  { %s932_s18 = scalar_lea.hbm %s1077_s0, 448 }
   0x5   :  { %p933_p0 = scmp.ne.s32.totalorder %s1077_s0, %s932_s18  ;;  %p936_p1 = scmp.lt.u32.totalorder %s932_s18, %s1077_s0 }
   0x7   :  { %p938_p2 = pnand %p936_p1, %p933_p0 }
   0x9   :  { %941 = shalt.err (!%p938_p2)
}
   0xa   :  { %s942_s23 = scalar_lea.vmem %s18_s13, 448  ;;  %p947_p4 = scmp.lt.s32.totalorder %s18_s13, %s18_s13 }
   0xb   :  { %p943_p3 = scmp.ne.s32.totalorder %s18_s13, %s942_s23  ;;  %p948_p5 = scmp.lt.s32.totalorder %s942_s23, %s942_s23 }
   0xd   :  { %p949_p6 = por %p948_p5, %p947_p4 }
   0xf   :  { %p950_p7 = pnand %p949_p6, %p943_p3 }
  0x11   :  { %953 = shalt.err (!%p950_p7)
}
  0x12   :  { %20 = dma.hbm_to_vmem [thread:$0]  %s1077_s0, 448, %s18_s13, [#allocation3]  }
  0x13   :  { %s954_s28 = scalar_lea.hbm %s1078_s1, 7168 }
  0x14   :  { %p955_p8 = scmp.ne.s32.totalorder %s1078_s1, %s954_s28  ;;  %p958_p9 = scmp.lt.u32.totalorder %s954_s28, %s1078_s1 }
  0x16   :  { %p960_p10 = pnand %p958_p9, %p955_p8 }
  0x18   :  { %963 = shalt.err (!%p960_p10)
}
  0x19   :  { %s964_s6 = scalar_lea.vmem %s1031_s15, 7168  ;;  %p969_p12 = scmp.lt.s32.totalorder %s1031_s15, %s1031_s15 }
  0x1a   :  { %p965_p11 = scmp.ne.s32.totalorder %s1031_s15, %s964_s6  ;;  %p970_p13 = scmp.lt.s32.totalorder %s964_s6, %s964_s6 }
  0x1c   :  { %p971_p0 = por %p970_p13, %p969_p12 }
  0x1e   :  { %p972_p1 = pnand %p971_p0, %p965_p11 }
  0x20   :  { %975 = shalt.err (!%p972_p1)
}
  0x21   :  { %s1006_s0 = smov 64   ;;  %s1007_s7 = smov 4  }
  0x22   :  { %32 = dma.hbm_to_vmem [thread:$0]  %s1078_s1, 7168, %s1031_s15, [#allocation6], %s1006_s0, %s1006_s0, %s1007_s7  }
  0x23   :  { %998 = dma.done.wait [#allocation3], 448  }
  0x24   :  { %999 = vsyncadd [#allocation3], 4294966848 }
  0x25   :  { %1000 = dma.done.wait [#allocation6], 7168  }
  0x26   :  { %1001 = vsyncadd [#allocation6], 4294960128  ;;  %v869_v0 = vld [vmem:[#allocation5 + $0x40] sm:$0xff]   ;;  %v873_v4 = vld [vmem:[#allocation5 + $0x48] sm:$0xff]   ;;  %v1008_v42 = vmov 0.0   ;;  %vm1009_vm0 = vmmov 0  }
  0x27   :  { %v870_v1 = vld [vmem:[#allocation5] sm:$0xff]   ;;  %767 = vmatprep.subr.bf16.mxu0 %v869_v0  ;;  %v874_v5 = vld [vmem:[#allocation5 + $0x8] sm:$0xff]   ;;  %v877_v8 = vld [vmem:[#allocation5 + $0x50] sm:$0xff]   ;;  %s1010_s11 = smov [#allocation7]  }
  0x28   :  { %v871_v2 = vld [vmem:[#allocation5 + $0xc0] sm:$0xff]   ;;  %768 = vmatpush3.bf16.msra.mxu0 %v870_v1  ;;  %v875_v6 = vld [vmem:[#allocation5 + $0xc8] sm:$0xff]   ;;  %v878_v9 = vld [vmem:[#allocation5 + $0x10] sm:$0xff]  }
  0x29   :  { %v872_v3 = vld [vmem:[#allocation5 + $0x80] sm:$0xff]   ;;  %789 = vmatprep.subr.bf16.mxu1 %v871_v2  ;;  %769 = vmatprep.subr.bf16.mxu0 %v873_v4  ;;  %v876_v7 = vld [vmem:[#allocation5 + $0x88] sm:$0xff]   ;;  %v879_v10 = vld [vmem:[#allocation5 + $0xd0] sm:$0xff]  }
  0x2a   :  { %790 = vmatpush3.bf16.msra.mxu1 %v872_v3  ;;  %v880_v11 = vld [vmem:[#allocation5 + $0x90] sm:$0xff]   ;;  %v881_v12 = vld [vmem:[#allocation5 + $0x58] sm:$0xff]   ;;  %v885_v16 = vld [vmem:[#allocation5 + $0x60] sm:$0xff]  }
  0x2b   :  { %791 = vmatprep.subr.bf16.mxu1 %v875_v6  ;;  %v882_v13 = vld [vmem:[#allocation5 + $0x18] sm:$0xff]   ;;  %v886_v17 = vld [vmem:[#allocation5 + $0x20] sm:$0xff]   ;;  %v889_v20 = vld [vmem:[#allocation5 + $0x68] sm:$0xff]  }
  0x2c   :  { %770 = vmatpush3.bf16.msra.mxu0 %v874_v5  ;;  %v883_v14 = vld [vmem:[#allocation5 + $0xd8] sm:$0xff]   ;;  %v887_v18 = vld [vmem:[#allocation5 + $0xe0] sm:$0xff]   ;;  %v890_v21 = vld [vmem:[#allocation5 + $0x28] sm:$0xff]  }
  0x2d   :  { %771 = vmatprep.subr.bf16.mxu0 %v877_v8  ;;  %v884_v15 = vld [vmem:[#allocation5 + $0x98] sm:$0xff]   ;;  %v888_v19 = vld [vmem:[#allocation5 + $0xa0] sm:$0xff]   ;;  %v891_v22 = vld [vmem:[#allocation5 + $0xe8] sm:$0xff]  }
  0x2e   :  { %792 = vmatpush3.bf16.msra.mxu1 %v876_v7  ;;  %v892_v23 = vld [vmem:[#allocation5 + $0xa8] sm:$0xff]   ;;  %v893_v24 = vld [vmem:[#allocation5 + $0x70] sm:$0xff]   ;;  %v897_v28 = vld [vmem:[#allocation5 + $0x78] sm:$0xff]  }
  0x2f   :  { %793 = vmatprep.subr.bf16.mxu1 %v879_v10  ;;  %v894_v25 = vld [vmem:[#allocation5 + $0x30] sm:$0xff]   ;;  %v898_v29 = vld [vmem:[#allocation5 + $0x38] sm:$0xff]   ;;  %v42_v31 = vld [vmem:[#allocation2] sm:$0xff] }
  0x30   :  { %772 = vmatpush3.bf16.msra.mxu0 %v878_v9  ;;  %v895_v26 = vld [vmem:[#allocation5 + $0xf0] sm:$0xff]   ;;  %v899_v30 = vld [vmem:[#allocation5 + $0xf8] sm:$0xff]   ;;  %v704_v32 = vcombine.low %v42_v31, %v42_v31  ;;  %v705_v33 = vcombine.high %v42_v31, %v42_v31  ;;  %v903_v35 = vld [vmem:[#allocation5 + $0x140] sm:$0xff]  }
  0x31   :  { %773 = vmatprep.subr.bf16.mxu0 %v881_v12  ;;  %v896_v27 = vld [vmem:[#allocation5 + $0xb0] sm:$0xff]   ;;  %v902_v34 = vld [vmem:[#allocation5 + $0xb8] sm:$0xff]   ;;  %v906_v39 = vld [vmem:[#allocation5 + $0x100] sm:$0xff]  }
  0x32   :  { %794 = vmatpush3.bf16.msra.mxu1 %v880_v11  ;;  %v43_v36 = vld [vmem:[#allocation2 + $0x8] sm:$0xff]  ;;  %558 = vmatprep.mubr.bf16.mxu0 %v705_v33  ;;  %v907_v40 = vld [vmem:[#allocation5 + $0x180] sm:$0xff]   ;;  %v914_v48 = vld [vmem:[#allocation5 + $0x158] sm:$0xff]  }
  0x33   :  { %795 = vmatprep.subr.bf16.mxu1 %v883_v14  ;;  %v706_v37 = vcombine.low %v43_v36, %v43_v36  ;;  %v707_v38 = vcombine.high %v43_v36, %v43_v36  ;;  %v908_v41 = vld [vmem:[#allocation5 + $0x148] sm:$0xff]   ;;  %v911_v45 = vld [vmem:[#allocation5 + $0x150] sm:$0xff]   ;;  %v915_v49 = vld [vmem:[#allocation5 + $0x118] sm:$0xff]  }
  0x34   :  { %774 = vmatpush3.bf16.msra.mxu0 %v882_v13  ;;  %v909_v43 = vld [vmem:[#allocation5 + $0x108] sm:$0xff]   ;;  %v912_v46 = vld [vmem:[#allocation5 + $0x110] sm:$0xff]   ;;  %v917_v50 = vld [vmem:[#allocation5 + $0x160] sm:$0xff]  }
  0x35   :  { %775 = vmatprep.subr.bf16.mxu0 %v885_v16  ;;  %598 = vmatprep.mubr.bf16.mxu1 %v707_v38  ;;  %v910_v44 = vld [vmem:[#allocation5 + $0x188] sm:$0xff]   ;;  %v913_v47 = vld [vmem:[#allocation5 + $0x190] sm:$0xff]   ;;  %v916_v51 = vld [vmem:[#allocation5 + $0x198] sm:$0xff]  }
  0x36   :  { %796 = vmatpush3.bf16.msra.mxu1 %v884_v15  ;;  %v918_v52 = vld [vmem:[#allocation5 + $0x120] sm:$0xff]   ;;  %v920_v53 = vld [vmem:[#allocation5 + $0x168] sm:$0xff]   ;;  %v923_v56 = vld [vmem:[#allocation5 + $0x170] sm:$0xff]  }
  0x37   :  { %797 = vmatprep.subr.bf16.mxu1 %v887_v18  ;;  %v919_v54 = vld [vmem:[#allocation5 + $0x1a0] sm:$0xff]   ;;  %v921_v55 = vld [vmem:[#allocation5 + $0x128] sm:$0xff]   ;;  %v44_v58 = vld [vmem:[#allocation2 + $0x10] sm:$0xff] }
  0x38   :  { %776 = vmatpush3.bf16.msra.mxu0 %v886_v17  ;;  %v922_v57 = vld [vmem:[#allocation5 + $0x1a8] sm:$0xff]   ;;  %v924_v59 = vld [vmem:[#allocation5 + $0x130] sm:$0xff]   ;;  %v709_v60 = vcombine.high %v44_v58, %v44_v58  ;;  %v926_v61 = vld [vmem:[#allocation5 + $0x178] sm:$0xff]   ;;  %v708_v1 = vcombine.low %v44_v58, %v44_v58 }
  0x39   :  { %777 = vmatprep.subr.bf16.mxu0 %v889_v20  ;;  %v925_v62 = vld [vmem:[#allocation5 + $0x1b0] sm:$0xff]   ;;  %v927_v63 = vld [vmem:[#allocation5 + $0x138] sm:$0xff]   ;;  %v703_v4 = vld [vmem:[%s1079_s2] ss:$0 sm:$0xff]  ;;  %s693_s2 = sshll.u32 %s1010_s11, 4  ;;  %s694_s2 = int_to_ptr.vmem [resolvable:$true] %s693_s2 }
  0x3a   :  { %798 = vmatpush3.bf16.msra.mxu1 %v888_v19  ;;  %v930_v0 = vld [vmem:[#allocation5 + $0x1b8] sm:$0xff]   ;;  %s976_s12 = scalar_lea.vmem %s694_s2, 128  ;;  %p981_p3 = scmp.lt.s32.totalorder %s694_s2, %s694_s2 }
  0x3b   :  { %799 = vmatprep.subr.bf16.mxu1 %v891_v22  ;;  %v931_v2 = vld [vmem:[#allocation2 + $0x18] ss:$0 sps:$4 sm:$0xff]   ;;  %p977_p2 = scmp.ne.s32.totalorder %s694_s2, %s976_s12  ;;  %p982_p4 = scmp.lt.s32.totalorder %s976_s12, %s976_s12 }
  0x3c   :  { %778 = vmatpush3.bf16.msra.mxu0 %v890_v21 }
  0x3d   :  { %779 = vmatprep.subr.bf16.mxu0 %v893_v24  ;;  %p983_p5 = por %p982_p4, %p981_p3 }
  0x3e   :  { %800 = vmatpush3.bf16.msra.mxu1 %v892_v23 }
  0x3f   :  { %801 = vmatprep.subr.bf16.mxu1 %v895_v26  ;;  %p984_p6 = pnand %p983_p5, %p977_p2 }
  0x40   :  { %780 = vmatpush3.bf16.msra.mxu0 %v894_v25 }
  0x41   :  { %781 = vmatprep.subr.bf16.mxu0 %v897_v28 }
  0x42   :  { %802 = vmatpush3.bf16.msra.mxu1 %v896_v27 }
  0x43   :  { %803 = vmatprep.subr.bf16.mxu1 %v899_v30 }
  0x44   :  { %782 = vmatpush3.bf16.msra.mxu0 %v898_v29 }
  0x45   :  { %811 = vmatprep.subr.bf16.mxu0 %v903_v35 }
  0x46   :  { %804 = vmatpush3.bf16.msra.mxu1 %v902_v34 }
  0x47   :  { %559 = vmatmul.mubr.bf16.vlgmr.msra.gmra.mrb[0].mxu0 %v704_v32  ;;  %842 = vmatprep.subr.bf16.mxu1 %v1008_v42 }
  0x48   :  { %812 = vmatpush3.bf16.msra.mxu0 %v906_v39  ;;  %638 = vmatprep.mubr.bf16.mxu0 %v709_v60 }
  0x49   :  { %599 = vmatmul.mubr.bf16.vlgmr.msra.gmra.mrb[0].mxu1 %v706_v37  ;;  %813 = vmatprep.subr.bf16.mxu0 %v908_v41 }
  0x4a   :  { %843 = vmatpush3.bf16.msra.mxu1 %v907_v40  ;;  %858 = vmatprep.mubr.msk.bf16.mxu1 %vm1009_vm0, %v1008_v42 }
  0x4b   :  { %844 = vmatprep.subr.bf16.mxu1 %v1008_v42 }
  0x4c   :  { %814 = vmatpush3.bf16.msra.mxu0 %v909_v43 }
  0x4d   :  { %815 = vmatprep.subr.bf16.mxu0 %v911_v45 }
  0x4e   :  { %845 = vmatpush3.bf16.msra.mxu1 %v910_v44 }
  0x4f   :  { %846 = vmatprep.subr.bf16.mxu1 %v1008_v42 }
  0x50   :  { %816 = vmatpush3.bf16.msra.mxu0 %v912_v46 }
  0x51   :  { %817 = vmatprep.subr.bf16.mxu0 %v914_v48 }
  0x52   :  { %847 = vmatpush3.bf16.msra.mxu1 %v913_v47 }
  0x53   :  { %848 = vmatprep.subr.bf16.mxu1 %v1008_v42 }
  0x54   :  { %818 = vmatpush3.bf16.msra.mxu0 %v915_v49 }
  0x55   :  { %819 = vmatprep.subr.bf16.mxu0 %v917_v50 }
  0x56   :  { %849 = vmatpush3.bf16.msra.mxu1 %v916_v51 }
  0x57   :  { %850 = vmatprep.subr.bf16.mxu1 %v1008_v42 }
  0x58   :  { %820 = vmatpush3.bf16.msra.mxu0 %v918_v52 }
  0x59   :  { %821 = vmatprep.subr.bf16.mxu0 %v920_v53 }
  0x5a   :  { %851 = vmatpush3.bf16.msra.mxu1 %v919_v54 }
  0x5b   :  { %852 = vmatprep.subr.bf16.mxu1 %v1008_v42 }
  0x5c   :  { %822 = vmatpush3.bf16.msra.mxu0 %v921_v55 }
  0x5d   :  { %823 = vmatprep.subr.bf16.mxu0 %v923_v56 }
  0x5e   :  { %853 = vmatpush3.bf16.msra.mxu1 %v922_v57 }
  0x5f   :  { %854 = vmatprep.subr.bf16.mxu1 %v1008_v42 }
  0x60   :  { %824 = vmatpush3.bf16.msra.mxu0 %v924_v59 }
  0x61   :  { %825 = vmatprep.subr.bf16.mxu0 %v926_v61 }
  0x62   :  { %855 = vmatpush3.bf16.msra.mxu1 %v925_v62 }
  0x63   :  { %856 = vmatprep.subr.bf16.mxu1 %v1008_v42 }
  0x64   :  { %826 = vmatpush3.bf16.msra.mxu0 %v927_v63 }
  0x66   :  { %857 = vmatpush3.bf16.msra.mxu1 %v930_v0 }
  0x67   :  { %639 = vmatmul.mubr.bf16.vlgmr.msra.gmra.mrb[4].mxu0 %v708_v1 }
  0x69   :  { %859 = vmatmul.mubr.bf16.vlgmr.msra.gmra.mrb[4].mxu1 %v931_v2 }
 0x11a   :  { %v783_v3 = vpop.f32.mrb[0].mxu0 }
 0x11b   :  { %v784_v5 = vpop.f32.mrb[1].mxu0 }
 0x11c   :  { %v785_v6 = vadd.f32 %v784_v5, %v783_v3  ;;  %v786_v7 = vpop.f32.mrb[2].mxu0  ;;  %v805_v8 = vpop.f32.mrb[0].mxu1 }
 0x11d   :  { %v787_v9 = vpop.f32.mrb[3].mxu0  ;;  %v806_v10 = vpop.f32.mrb[1].mxu1 }
 0x11e   :  { %v561_v11 = vadd.f32 %v785_v6, %v703_v4  ;;  %v807_v12 = vadd.f32 %v806_v10, %v805_v8  ;;  %v808_v13 = vpop.f32.mrb[2].mxu1 }
 0x11f   :  { %v809_v14 = vpop.f32.mrb[3].mxu1 }
 0x120   :  { %v601_v15 = vadd.f32 %v807_v12, %v561_v11 }
 0x13a   :  { %v827_v16 = vpop.f32.mrb[4].mxu0 }
 0x13b   :  { %v828_v17 = vpop.f32.mrb[5].mxu0 }
 0x13c   :  { %v829_v18 = vadd.f32 %v828_v17, %v827_v16  ;;  %v830_v19 = vpop.f32.mrb[6].mxu0  ;;  %v680_v20 = vpop.f32.mrb[4].mxu1 }
 0x13d   :  { %v831_v21 = vpop.f32.mrb[7].mxu0  ;;  %v860_v22 = vpop.f32.mrb[5].mxu1 }
 0x13e   :  { %v641_v23 = vadd.f32 %v829_v18, %v601_v15  ;;  %v683_v24 = vpop.f32.mrb[6].mxu1 }
 0x13f   :  { %v861_v25 = vpop.f32.mrb[7].mxu1 }
 0x140   :  { %v681_v26 = vadd.f32 %v680_v20, %v641_v23 }
 0x142   :  { %686 = vst [vmem:[#allocation7] sm:$0xff] %v681_v26 }
 0x143   :  { %987 = shalt.err (!%p984_p6)
}
 0x144   :  { %s988_s15 = scalar_lea.hbm %s1080_s3, 128 }
 0x145   :  { %p989_p7 = scmp.ne.s32.totalorder %s1080_s3, %s988_s15  ;;  %p992_p8 = scmp.lt.u32.totalorder %s988_s15, %s1080_s3 }
 0x147   :  { %p994_p9 = pnand %p992_p8, %p989_p7 }
 0x149   :  { %997 = shalt.err (!%p994_p9)
}
 0x14a   :  { %696 = dma.vmem_to_hbm [thread:$0]  %s694_s2, 128, %s1080_s3, [#allocation4]  }
 0x14b   :  { %1002 = dma.done.wait [#allocation4], 128  }
 0x14c   :  { %1003 = vsyncadd [#allocation4], 4294967168 }
 0x14d   :  { %700 = vsyncpa [#allocation3], 1 }
 0x14e   :  { %701 = vsyncpa [#allocation6], 1 }
 0x14f   :  { %702 = vsyncpa [#allocation4], 1 }

</bundles_post_ra>
